<compile_context>
chip_gen: v7x
topology: tpu7x:2x2x1
jax: 0.10.0
libtpu: 0.0.40
codegen_flags: <defaults>
</compile_context>

<pallas_src>
import jax
import jax.numpy as jnp
from jax.experimental import pallas as pl
from jax.experimental.pallas import tpu as pltpu

SELU_ALPHA = 1.6732632423543772
SELU_SCALE = 1.0507009873554805
BN_EPS = 1e-5


def _round_up(x, m):
    return ((x + m - 1) // m) * m


def td_predictor_kernel(x_ref, w1_ref, b1_ref, w2_ref, b2_ref, o_ref):
    # --- Linear1 (BatchNorm pre-folded into w1/b1): (TILE_B, F) @ (F, H) + (1, H) ---
    h = jnp.dot(x_ref[...], w1_ref[...], preferred_element_type=jnp.float32)
    h = h + b1_ref[...]

    # --- SELU (clamp the exp argument so the unselected branch never overflows) ---
    h = SELU_SCALE * jnp.where(
        h > 0.0, h, SELU_ALPHA * (jnp.exp(jnp.minimum(h, 0.0)) - 1.0))

    # --- Dropout: identity in eval mode ---
    # TODO(synk): training-mode dropout (pltpu.prng_random_bits mask) not needed for inference.

    # --- Linear2 (out_features = 1): VPU multiply + lane reduction instead of a
    #     degenerate N=1 MXU matmul; b2 is a scalar read from SMEM. ---
    logits = jnp.sum(h * w2_ref[...], axis=-1, keepdims=True) + b2_ref[0]

    # --- Sigmoid (EUP exp + reciprocal). Output tile is (TILE_B, 1); its store is
    #     a masked partial write, but total output traffic is only 4*B bytes. ---
    o_ref[...] = pl.reciprocal(1.0 + jnp.exp(-logits))


def fold_batchnorm(params):
    """Fold eval-mode BatchNorm1d into Linear1 (pure constant folding)."""
    scale = params["gamma"] * jax.lax.rsqrt(params["running_var"] + BN_EPS)   # (1, H)
    w1f = params["w1"] * scale                                                # (F, H)
    b1f = (params["b1"] - params["running_mean"]) * scale + params["beta"]    # (1, H)
    w2row = params["w2"].reshape(1, -1)                                       # (1, H)
    b2 = params["b2"].reshape(1)                                              # (1,) -> SMEM scalar
    return w1f, b1f, w2row, b2


def td_predictor_forward(x, params, tile_b_max=1024):
    """x: (B, F) float32.  Returns (B, 1) float32 sigmoid probabilities."""
    B, F = x.shape
    H = params["w1"].shape[1]
    w1f, b1f, w2row, b2 = fold_batchnorm(params)

    # Batch tiling: sublane-aligned; large tiles amortize the ~0.35 us/step overhead.
    tile_b = min(tile_b_max, _round_up(B, 8))
    B_pad = _round_up(B, tile_b)
    if B_pad != B:
        x = jnp.pad(x, ((0, B_pad - B), (0, 0)))
    grid = (B_pad // tile_b,)

    # Explicit VMEM budget: double-buffered x/out tiles + resident params (+ margin).
    vmem_needed = 4 * (2 * tile_b * F + 2 * tile_b * 128 + F * H + 3 * H)
    vmem_limit = int(min(max(2 * vmem_needed + (1 << 20), 4 << 20), 64 << 20))

    cost = pl.CostEstimate(
        flops=int(2 * B_pad * F * H + 2 * B_pad * H),
        transcendentals=int(2 * B_pad * H),
        bytes_accessed=int(4 * (B_pad * F + F * H + 3 * H + B_pad + 1)),
    )

    out = pl.pallas_call(
        td_predictor_kernel,
        out_shape=jax.ShapeDtypeStruct((B_pad, 1), jnp.float32),
        grid=grid,
        in_specs=[
            pl.BlockSpec((tile_b, F), lambda i: (i, 0)),            # x: streamed batch tiles
            pl.BlockSpec((F, H), lambda i: (0, 0)),                 # folded w1 (VMEM resident)
            pl.BlockSpec((1, H), lambda i: (0, 0)),                 # folded b1 (VMEM resident)
            pl.BlockSpec((1, H), lambda i: (0, 0)),                 # w2 as a lane row (resident)
            pl.BlockSpec(memory_space=pltpu.MemorySpace.SMEM),      # b2 scalar
        ],
        out_specs=pl.BlockSpec((tile_b, 1), lambda i: (i, 0)),
        compiler_params=pltpu.CompilerParams(
            dimension_semantics=("parallel",),
            vmem_limit_bytes=vmem_limit,
        ),
        cost_estimate=cost,
    )(x, w1f, b1f, w2row, b2)
    return out[:B]


def init_params(key, input_size, hidden_size):
    """Deterministic synthetic parameters matching nn.Linear / nn.BatchNorm1d shapes."""
    k1, k2, k3, k4, k5, k6 = jax.random.split(key, 6)
    bound1 = 1.0 / jnp.sqrt(input_size)
    bound2 = 1.0 / jnp.sqrt(hidden_size)
    return {
        # Linear(input_size, hidden_size): torch weight (H, F) -> stored transposed (F, H)
        "w1": jax.random.uniform(k1, (input_size, hidden_size),
                                 minval=-bound1, maxval=bound1, dtype=jnp.float32),
        "b1": jax.random.uniform(k2, (1, hidden_size),
                                 minval=-bound1, maxval=bound1, dtype=jnp.float32),
        # BatchNorm1d(hidden_size): deterministic non-trivial running stats
        "gamma": jnp.ones((1, hidden_size), jnp.float32),
        "beta": jnp.zeros((1, hidden_size), jnp.float32),
        "running_mean": 0.1 * jax.random.normal(k3, (1, hidden_size), dtype=jnp.float32),
        "running_var": 1.0 + 0.1 * jax.random.uniform(k4, (1, hidden_size), dtype=jnp.float32),
        # Linear(hidden_size, 1): torch weight (1, H) -> stored transposed (H, 1)
        "w2": jax.random.uniform(k5, (hidden_size, 1),
                                 minval=-bound2, maxval=bound2, dtype=jnp.float32),
        "b2": jax.random.uniform(k6, (1, 1),
                                 minval=-bound2, maxval=bound2, dtype=jnp.float32),
    }


def reference_forward(x, p):
    """Pure-JAX reference with unfolded BatchNorm (eval-mode semantics)."""
    h = x @ p["w1"] + p["b1"]
    h = (h - p["running_mean"]) * (p["gamma"] / jnp.sqrt(p["running_var"] + BN_EPS)) + p["beta"]
    h = SELU_SCALE * jnp.where(h > 0.0, h,
                               SELU_ALPHA * (jnp.exp(jnp.minimum(h, 0.0)) - 1.0))
    logits = h @ p["w2"] + p["b2"]
    return 1.0 / (1.0 + jnp.exp(-logits))


if __name__ == "__main__":
    key = jax.random.PRNGKey(0)
    k_x, k_p = jax.random.split(key)

    batch, input_size, hidden_size = 8, 32, 32
    x = jax.random.normal(k_x, (batch, input_size), dtype=jnp.float32)
    params = init_params(k_p, input_size, hidden_size)

    out = td_predictor_forward(x, params)
    out = jax.block_until_ready(out)

    ref = reference_forward(x, params)
    assert out.shape == (batch, 1)
    assert jnp.allclose(out, ref, atol=1e-5, rtol=1e-4), "mismatch vs JAX reference"

    print("KERNEL_OK")
</pallas_src>

<mosaic_0001>
module attributes {stable_mosaic.version = 11 : i64} {
  func.func @td_predictor_kernel(%arg0: i32, %arg1: memref<8x32xf32, #tpu.memory_space<vmem>>, %arg2: memref<32x32xf32, #tpu.memory_space<vmem>>, %arg3: memref<1x32xf32, #tpu.memory_space<vmem>>, %arg4: memref<1x32xf32, #tpu.memory_space<vmem>>, %arg5: memref<1xf32, #tpu.memory_space<smem>>, %arg6: memref<8x1xf32, #tpu.memory_space<vmem>>) attributes {dimension_semantics = [#tpu.dimension_semantics<parallel>], iteration_bounds = array<i64: 1>, scalar_prefetch = 0 : i64, scratch_operands = 0 : i64, tpu.core_type = #tpu.core_type<tc>, window_params = [{transform_indices = @transform_0, window_bounds = array<i64: 8, 32>}, {pipeline_mode = #tpu.pipeline_mode<synchronous>, transform_indices = @transform_1, window_bounds = array<i64: 32, 32>}, {pipeline_mode = #tpu.pipeline_mode<synchronous>, transform_indices = @transform_2, window_bounds = array<i64: 1, 32>}, {pipeline_mode = #tpu.pipeline_mode<synchronous>, transform_indices = @transform_3, window_bounds = array<i64: 1, 32>}, {transform_indices = @transform_4, window_bounds = array<i64: 1>}, {transform_indices = @transform_5, window_bounds = array<i64: 8, 1>}]} {
    %c0 = arith.constant 0 : index
    %c0_0 = arith.constant 0 : index
    %0 = vector.load %arg1[%c0, %c0_0] : memref<8x32xf32, #tpu.memory_space<vmem>>, vector<8x32xf32>
    %c0_1 = arith.constant 0 : index
    %c0_2 = arith.constant 0 : index
    %1 = vector.load %arg2[%c0_1, %c0_2] : memref<32x32xf32, #tpu.memory_space<vmem>>, vector<32x32xf32>
    %cst = arith.constant dense<0.000000e+00> : vector<8x32xf32>
    %2 = tpu.matmul %0, %1, %cst {dimension_numbers = #tpu.dot_dimension_numbers<[1], [0], [0], [1], [0, 0, 1, 1], [], []>} : vector<8x32xf32>, vector<32x32xf32>, vector<8x32xf32> -> vector<8x32xf32>
    %c0_3 = arith.constant 0 : index
    %c0_4 = arith.constant 0 : index
    %3 = vector.load %arg3[%c0_3, %c0_4] : memref<1x32xf32, #tpu.memory_space<vmem>>, vector<1x32xf32>
    %4 = vector.broadcast %3 : vector<1x32xf32> to vector<8x32xf32>
    %5 = arith.addf %2, %4 : vector<8x32xf32>
    %cst_5 = arith.constant 0.000000e+00 : f32
    %6 = vector.broadcast %cst_5 : f32 to vector<8x32xf32>
    %7 = arith.cmpf ogt, %5, %6 : vector<8x32xf32>
    %cst_6 = arith.constant 0.000000e+00 : f32
    %8 = vector.broadcast %cst_6 : f32 to vector<8x32xf32>
    %9 = arith.minimumf %5, %8 : vector<8x32xf32>
    %10 = math.exp %9 : vector<8x32xf32>
    %cst_7 = arith.constant 1.000000e+00 : f32
    %11 = vector.broadcast %cst_7 : f32 to vector<8x32xf32>
    %12 = arith.subf %10, %11 : vector<8x32xf32>
    %cst_8 = arith.constant 1.67326319 : f32
    %13 = vector.broadcast %cst_8 : f32 to vector<8x32xf32>
    %14 = arith.mulf %13, %12 : vector<8x32xf32>
    %15 = arith.select %7, %5, %14 : vector<8x32xi1>, vector<8x32xf32>
    %cst_9 = arith.constant 1.05070102 : f32
    %16 = vector.broadcast %cst_9 : f32 to vector<8x32xf32>
    %17 = arith.mulf %16, %15 : vector<8x32xf32>
    %c0_10 = arith.constant 0 : index
    %c0_11 = arith.constant 0 : index
    %18 = vector.load %arg4[%c0_10, %c0_11] : memref<1x32xf32, #tpu.memory_space<vmem>>, vector<1x32xf32>
    %19 = vector.broadcast %18 : vector<1x32xf32> to vector<8x32xf32>
    %20 = arith.mulf %17, %19 : vector<8x32xf32>
    %cst_12 = arith.constant dense<0.000000e+00> : vector<8xf32>
    %21 = vector.multi_reduction <add>, %20, %cst_12 [1] : vector<8x32xf32> to vector<8xf32>
    %22 = vector.shape_cast %21 : vector<8xf32> to vector<8x1xf32>
    %c0_13 = arith.constant 0 : index
    %23 = memref.load %arg5[%c0_13] : memref<1xf32, #tpu.memory_space<smem>>
    %24 = vector.broadcast %23 : f32 to vector<8x1xf32>
    %25 = arith.addf %22, %24 : vector<8x1xf32>
    %cst_14 = arith.constant 0.000000e+00 : f32
    %26 = vector.broadcast %cst_14 : f32 to vector<8x1xf32>
    %27 = arith.subf %26, %25 : vector<8x1xf32>
    %28 = math.exp %27 : vector<8x1xf32>
    %cst_15 = arith.constant 1.000000e+00 : f32
    %29 = vector.broadcast %cst_15 : f32 to vector<8x1xf32>
    %30 = arith.addf %29, %28 : vector<8x1xf32>
    %31 = tpu.reciprocal %30 : vector<8x1xf32> -> vector<8x1xf32>
    %c0_16 = arith.constant 0 : index
    %c0_17 = arith.constant 0 : index
    %32 = vector.load %arg6[%c0_16, %c0_17] : memref<8x1xf32, #tpu.memory_space<vmem>>, vector<8x1xf32>
    tpu.vector_store %arg6[%c0_16, %c0_17], %31 {strides = array<i32>} : memref<8x1xf32, #tpu.memory_space<vmem>>, vector<8x1xf32>,
    return
  }
  func.func @transform_0(%arg0: i32) -> (i32, i32) {
    %c0_i32 = arith.constant 0 : i32
    %c0_i32_0 = arith.constant 0 : i32
    return %arg0, %c0_i32 : i32, i32
  }
  func.func @transform_1(%arg0: i32) -> (i32, i32) {
    %c0_i32 = arith.constant 0 : i32
    %c0_i32_0 = arith.constant 0 : i32
    %c0_i32_1 = arith.constant 0 : i32
    return %c0_i32, %c0_i32_0 : i32, i32
  }
  func.func @transform_2(%arg0: i32) -> (i32, i32) {
    %c0_i32 = arith.constant 0 : i32
    %c0_i32_0 = arith.constant 0 : i32
    %c0_i32_1 = arith.constant 0 : i32
    return %c0_i32, %c0_i32_0 : i32, i32
  }
  func.func @transform_3(%arg0: i32) -> (i32, i32) {
    %c0_i32 = arith.constant 0 : i32
    %c0_i32_0 = arith.constant 0 : i32
    %c0_i32_1 = arith.constant 0 : i32
    return %c0_i32, %c0_i32_0 : i32, i32
  }
  func.func @transform_4(%arg0: i32) -> i32 {
    %c0_i32 = arith.constant 0 : i32
    %c0_i32_0 = arith.constant 0 : i32
    return %c0_i32 : i32
  }
  func.func @transform_5(%arg0: i32) -> (i32, i32) {
    %c0_i32 = arith.constant 0 : i32
    %c0_i32_0 = arith.constant 0 : i32
    return %arg0, %c0_i32 : i32, i32
  }
}

</mosaic_0001>

<bundles_post_ra>
// kernel: tpu_custom_call.1
= control target key start
LH: loop header
LB: loop body
LE: loop exit
PB: predicated region body
PF: predicated region fallthrough
CT: control target
= control target key end

     0   :  { %11 = vsyncpa [#allocation4], 0  ;;  %s337_s0 = inlined_call_operand.hbm [shape: f32[8,32], index: 0, kind: input, shape index: {}]   ;;  %s338_s1 = inlined_call_operand.hbm [shape: f32[32,32], index: 1, kind: input, shape index: {}]   ;;  %s339_s2 = inlined_call_operand.vmem [shape: f32[1,32], index: 2, kind: input, shape index: {}]   ;;  %s340_s3 = inlined_call_operand.vmem [shape: f32[1,32], index: 3, kind: input, shape index: {}]   ;;  %s341_s4 = inlined_call_operand.<no memory space> [shape: f32[1], index: 4, kind: input, shape index: {}]   ;;  %s342_s5 = inlined_call_operand.vmem [shape: f32[8,1], index: 5, kind: output, shape index: {}]  }
   0x1   :  { %12 = vsyncpa [#allocation6], 0  ;;  %s255_s18 = smov [#allocation3]   ;;  %s256_s20 = smov [#allocation5]  }
   0x2   :  { %s19_s19 = sshll.u32 %s255_s18, 4  ;;  %s28_s21 = sshll.u32 %s256_s20, 4  ;;  %s20_s19 = int_to_ptr.vmem [resolvable:$true] %s19_s19  ;;  %s292_s21 = int_to_ptr.vmem [resolvable:$true] %s28_s21 }
   0x3   :  { %s207_s24 = scalar_lea.hbm %s337_s0, 128 }
   0x4   :  { %p208_p0 = scmp.ne.s32.totalorder %s337_s0, %s207_s24  ;;  %p211_p1 = scmp.lt.u32.totalorder %s207_s24, %s337_s0 }
   0x6   :  { %p213_p2 = pnand %p211_p1, %p208_p0 }
   0x8   :  { %216 = shalt.err (!%p213_p2)
}
   0x9   :  { %s217_s29 = scalar_lea.vmem %s20_s19, 128  ;;  %p222_p4 = scmp.lt.s32.totalorder %s20_s19, %s20_s19 }
   0xa   :  { %p218_p3 = scmp.ne.s32.totalorder %s20_s19, %s217_s29  ;;  %p223_p5 = scmp.lt.s32.totalorder %s217_s29, %s217_s29 }
   0xc   :  { %p224_p6 = por %p223_p5, %p222_p4 }
   0xe   :  { %p225_p7 = pnand %p224_p6, %p218_p3 }
  0x10   :  { %228 = shalt.err (!%p225_p7)
}
  0x11   :  { %22 = dma.hbm_to_vmem [thread:$0]  %s337_s0, 128, %s20_s19, [#allocation4]  }
  0x12   :  { %s229_s9 = scalar_lea.hbm %s338_s1, 512 }
  0x13   :  { %p230_p8 = scmp.ne.s32.totalorder %s338_s1, %s229_s9  ;;  %p233_p9 = scmp.lt.u32.totalorder %s229_s9, %s338_s1 }
  0x15   :  { %p235_p10 = pnand %p233_p9, %p230_p8 }
  0x17   :  { %238 = shalt.err (!%p235_p10)
}
  0x18   :  { %s239_s14 = scalar_lea.vmem %s292_s21, 512  ;;  %p244_p12 = scmp.lt.s32.totalorder %s292_s21, %s292_s21 }
  0x19   :  { %p240_p11 = scmp.ne.s32.totalorder %s292_s21, %s239_s14  ;;  %p245_p13 = scmp.lt.s32.totalorder %s239_s14, %s239_s14 }
  0x1b   :  { %p246_p0 = por %p245_p13, %p244_p12 }
  0x1d   :  { %p247_p1 = pnand %p246_p0, %p240_p11 }
  0x1f   :  { %250 = shalt.err (!%p247_p1)
}
  0x20   :  { %s257_s0 = smov 128   ;;  %s258_s15 = smov 8  }
  0x21   :  { %34 = dma.hbm_to_vmem [thread:$0]  %s338_s1, 512, %s292_s21, [#allocation6], %s257_s0, %s257_s0, %s258_s15  }
  0x22   :  { %251 = dma.done.wait [#allocation4], 128  }
  0x23   :  { %252 = vsyncadd [#allocation4], 4294967168 }
  0x24   :  { %253 = dma.done.wait [#allocation6], 512  }
  0x25   :  { %254 = vsyncadd [#allocation6], 4294966784  ;;  %v259_v0 = vmov 0.0|0.0   ;;  %vm260_vm0 = vmmov 0   ;;  %v261_v1 = vmov 0.0   ;;  %v48_v2 = vld [vmem:[#allocation5] sm:$0xff]  ;;  %v153_v23 = vstv %s341_s4 }
  0x26   :  { %188 = vmatprep.subr.bf16.mxu0 %v259_v0  ;;  %185 = vmatprep.mubr.msk.f32.mxu0 %vm260_vm0, %v261_v1  ;;  %v49_v3 = vld [vmem:[#allocation5 + $0x8] sm:$0xff]  ;;  %v50_v4 = vld [vmem:[#allocation5 + $0x10] sm:$0xff]  ;;  %v51_v6 = vld [vmem:[#allocation5 + $0x18] sm:$0xff]  ;;  %vm59_vm1 = vcmask 261120   ;;  %vm160_vm3 = vcmask 7168  }
  0x27   :  { %v189_v5 = vpack.c.bf16 %v49_v3, %v48_v2  ;;  %v192_v7 = vpack.c.bf16 %v51_v6, %v50_v4  ;;  %v47_v8 = vld [vmem:[#allocation3] sm:$0xff] }
  0x28   :  { %v168_v9 = vld [vmem:[%s339_s2] ss:$0 sm:$0xff] }
  0x29   :  { %190 = vmatpush3.bf16.msra.mxu0 %v189_v5  ;;  %v171_v19 = vld [vmem:[%s340_s3] ss:$0 sm:$0xff] }
  0x2a   :  { %191 = vmatprep.subr.bf16.mxu0 %v259_v0 }
  0x2d   :  { %193 = vmatpush3.bf16.msra.mxu0 %v192_v7 }
  0x30   :  { %186 = vmatmul.mubr.msk.f32.vlgmr.msra.gmra.mrb[0].mxu0 %vm59_vm1, %v47_v8 }
 0x103   :  { %v129_v10 = vpop.f32.mrb[0].mxu0 }
 0x104   :  { %v130_v11 = vadd.f32 %v168_v9, %v129_v10  ;;  %v187_v12 = vpop.f32.mrb[1].mxu0 }
 0x106   :  { %v134_v13 = vmin.f32 %v130_v11, 0.0  ;;  %vm133_vm2 = vcmp.gt.f32.partialorder %v130_v11, 0.0 }
 0x108   :  { %v135_v14 = vmul.f32 1.442695, %v134_v13 }
 0x10a   :  { %201 = vpow2.f32 %v135_v14 }
 0x114   :  { %v202_v15 = vpop.eup %201 }
 0x115   :  { %v170_v16 = vadd.f32 -1.0, %v202_v15 }
 0x117   :  { %v138_v17 = vmul.f32 1.6732632, %v170_v16 }
 0x119   :  { %v139_v18 = vsel %vm133_vm2, %v130_v11, %v138_v17 }
 0x11a   :  { %v140_v20 = vmul.f32 1.050701, %v139_v18 }
 0x11c   :  { %v148_v21 = vmul.f32 %v171_v19, %v140_v20 }
 0x11e   :  { %v149_v22 = vsel %vm59_vm1, %v148_v21, 0.0 }
 0x11f   :  { %150 = vadd.xlane.f32.xlu0 %v149_v22 }
 0x1ac   :  { %v151_v24 = vpop.xlane.xlu0 %150 }
 0x1ad   :  { %v154_v25 = vadd.f32 %v153_v23, %v151_v24 }
 0x1af   :  { %v155_v26 = vsub.f32 0.0, %v154_v25 }
 0x1b1   :  { %v156_v27 = vmul.f32 1.442695, %v155_v26 }
 0x1b3   :  { %203 = vpow2.f32 %v156_v27 }
 0x1bd   :  { %v204_v28 = vpop.eup %203 }
 0x1be   :  { %v158_v29 = vadd.f32 1.0, %v204_v28 }
 0x1c0   :  { %205 = vrcp.f32 %v158_v29 }
 0x1ca   :  { %v206_v30 = vpop.eup %205 }
 0x1cb   :  { %161 = vst.msk [vmem:[%s342_s5] sm:$0xff] %vm160_vm3, %v206_v30 }
 0x1cc   :  { %166 = vsyncpa [#allocation4], 1 }
 0x1cd   :  { %167 = vsyncpa [#allocation6], 1 }

</bundles_post_ra>
